<compile_context>
chip_gen: v7x
topology: tpu7x:2x2x1
jax: 0.10.0
libtpu: 0.0.40
codegen_flags: <defaults>
</compile_context>

<pallas_src>
import functools

import jax
import jax.numpy as jnp
from jax.experimental import pallas as pl
from jax.experimental.pallas import tpu as pltpu


def _ffn_kernel(x_ref, w1_ref, b1_ref, w2_ref, b2_ref, g_ref, bt_ref, o_ref, *,
                d_valid):
    x = x_ref[...]                                          # (tile, Dp), input dtype

    # 1x1 conv #1 (d_in -> d_hid): MXU matmul in the operand dtype, f32 accumulate.
    h = jnp.dot(x, w1_ref[...], preferred_element_type=jnp.float32)
    h = jnp.maximum(h + b1_ref[...], 0.0)                   # bias (f32) + ReLU

    # 1x1 conv #2 (d_hid -> d_in): cast activations back to operand dtype for MXU.
    h = h.astype(w2_ref.dtype)
    y = jnp.dot(h, w2_ref[...], preferred_element_type=jnp.float32)
    y = y + b2_ref[...] + x.astype(jnp.float32)             # bias + residual (dropout = id)

    # LayerNorm over the valid (un-padded) feature lanes, f32 math, eps = 1e-5.
    d_pad = y.shape[-1]
    inv_d = jnp.float32(1.0 / d_valid)
    if d_valid == d_pad:
        mean = jnp.sum(y, axis=-1, keepdims=True) * inv_d
        c = y - mean
        var = jnp.sum(c * c, axis=-1, keepdims=True) * inv_d
    else:
        # padded lanes of y are exactly zero (zero-padded x / weights / biases),
        # so the sum is already over the valid lanes; just mask the centering.
        lane = jax.lax.broadcasted_iota(jnp.int32, y.shape, 1)
        mask = lane < d_valid
        mean = jnp.sum(y, axis=-1, keepdims=True) * inv_d
        c = jnp.where(mask, y - mean, 0.0)
        var = jnp.sum(c * c, axis=-1, keepdims=True) * inv_d

    inv = jax.lax.rsqrt(var + 1e-5)
    out = c * inv * g_ref[...] + bt_ref[...]
    o_ref[...] = out.astype(o_ref.dtype)


def _round_up(n, m):
    return (n + m - 1) // m * m


def _const_spec(shape, single_buffer):
    """BlockSpec for a grid-invariant (constant) operand."""
    ndim = len(shape)
    index_map = lambda i: (0,) * ndim
    if single_buffer:
        # Constant block: one VMEM copy is enough -> frees VMEM for bigger tiles.
        return pl.BlockSpec(shape, index_map,
                            pipeline_mode=pl.Buffered(buffer_count=1))
    return pl.BlockSpec(shape, index_map)


@functools.partial(jax.jit, static_argnames=("tile_n", "single_buffer_params"))
def positionwise_feed_forward(x, w1, b1, w2, b2, gamma, beta, *, tile_n=256,
                              single_buffer_params=None):
    """x: (B, L, d_in). Weights laid out as:
       w1: (d_in, d_hid), b1: (1, d_hid), w2: (d_hid, d_in), b2/gamma/beta: (1, d_in).
       Matmuls run in x/w dtype (use bf16 inputs for MXU-native speed); accumulation
       and LayerNorm are f32."""
    B, L, d_in = x.shape
    d_hid = w1.shape[1]
    N = B * L

    # Token tile: big enough to fill the MXU, multiple of the sublane packing.
    sub = 16 if x.dtype == jnp.bfloat16 else 8
    tile = max(sub, min(tile_n, _round_up(N, sub)))
    tile = _round_up(tile, sub)
    n_pad = _round_up(N, tile)

    # Lane-dense feature dims (multiples of 128); zero padding keeps math exact.
    d_in_p = _round_up(d_in, 128)
    d_hid_p = _round_up(d_hid, 128)

    x2d = x.reshape(N, d_in)
    x2d = jnp.pad(x2d, ((0, n_pad - N), (0, d_in_p - d_in)))
    w1p = jnp.pad(w1, ((0, d_in_p - d_in), (0, d_hid_p - d_hid)))
    w2p = jnp.pad(w2, ((0, d_hid_p - d_hid), (0, d_in_p - d_in)))
    # Tiny per-feature params: pre-cast to f32 host-side (hoists casts out of kernel).
    b1p = jnp.pad(b1.astype(jnp.float32), ((0, 0), (0, d_hid_p - d_hid)))
    b2p = jnp.pad(b2.astype(jnp.float32), ((0, 0), (0, d_in_p - d_in)))
    gp = jnp.pad(gamma.astype(jnp.float32), ((0, 0), (0, d_in_p - d_in)))
    btp = jnp.pad(beta.astype(jnp.float32), ((0, 0), (0, d_in_p - d_in)))

    w_bytes = (w1p.size + w2p.size) * w1p.dtype.itemsize
    if single_buffer_params is None:
        # Only bother single-buffering constants when the second copy would
        # actually cost meaningful VMEM.
        single_buffer_params = w_bytes >= (1 << 20)

    # Explicit VMEM budget (v7x: 64 MiB/TC physical, 32 MiB scoped default).
    io_bytes = x.dtype.itemsize
    param_copies = 1 if single_buffer_params else 2
    est = (
        w_bytes * param_copies
        + (b1p.size + b2p.size + gp.size + btp.size) * 4 * param_copies
        + 2 * tile * d_in_p * io_bytes          # double-buffered x tile
        + 2 * tile * d_in_p * io_bytes          # double-buffered out tile
        + tile * d_hid_p * 4                    # f32 hidden activations
        + 2 * tile * d_in_p * 4                 # f32 y / out intermediates
    )
    vmem_limit = int(min(max(2 * est, 32 << 20), 64 << 20))

    flops = 2 * 2 * n_pad * d_in_p * d_hid_p + 10 * n_pad * d_in_p
    bytes_accessed = (2 * n_pad * d_in_p * io_bytes + w_bytes
                      + (b1p.size + b2p.size + gp.size + btp.size) * 4)
    cost = pl.CostEstimate(flops=flops, transcendentals=n_pad,
                           bytes_accessed=bytes_accessed)

    kernel = functools.partial(_ffn_kernel, d_valid=d_in)

    out2d = pl.pallas_call(
        kernel,
        out_shape=jax.ShapeDtypeStruct((n_pad, d_in_p), x.dtype),
        grid_spec=pltpu.PrefetchScalarGridSpec(
            num_scalar_prefetch=0,
            grid=(n_pad // tile,),
            in_specs=[
                pl.BlockSpec((tile, d_in_p), lambda i: (i, 0)),      # x tokens
                _const_spec((d_in_p, d_hid_p), single_buffer_params),  # w1
                _const_spec((1, d_hid_p), single_buffer_params),       # b1 (f32)
                _const_spec((d_hid_p, d_in_p), single_buffer_params),  # w2
                _const_spec((1, d_in_p), single_buffer_params),        # b2 (f32)
                _const_spec((1, d_in_p), single_buffer_params),        # gamma (f32)
                _const_spec((1, d_in_p), single_buffer_params),        # beta (f32)
            ],
            out_specs=pl.BlockSpec((tile, d_in_p), lambda i: (i, 0)),
        ),
        compiler_params=pltpu.CompilerParams(
            dimension_semantics=("parallel",),
            vmem_limit_bytes=vmem_limit,
        ),
        cost_estimate=cost,
    )(x2d, w1p, b1p, w2p, b2p, gp, btp)

    return out2d[:N, :d_in].reshape(B, L, d_in)


def _reference(x, w1, b1, w2, b2, gamma, beta):
    # Pure-JAX reference mirroring the PyTorch forward (eval mode), f32 math.
    h = jnp.maximum(jnp.einsum("bld,dh->blh", x, w1) + b1[0], 0.0)
    y = jnp.einsum("blh,hd->bld", h, w2) + b2[0] + x
    mean = jnp.mean(y, axis=-1, keepdims=True)
    var = jnp.mean((y - mean) ** 2, axis=-1, keepdims=True)
    return (y - mean) / jnp.sqrt(var + 1e-5) * gamma[0] + beta[0]


if __name__ == "__main__":
    key = jax.random.PRNGKey(0)
    B, L, d_in, d_hid = 2, 8, 32, 64

    k_x, k_w1, k_b1, k_w2, k_b2 = jax.random.split(key, 5)

    x = jax.random.normal(k_x, (B, L, d_in), dtype=jnp.float32)
    w1 = jax.random.normal(k_w1, (d_in, d_hid), dtype=jnp.float32) * 0.05
    b1 = jax.random.normal(k_b1, (1, d_hid), dtype=jnp.float32) * 0.05
    w2 = jax.random.normal(k_w2, (d_hid, d_in), dtype=jnp.float32) * 0.05
    b2 = jax.random.normal(k_b2, (1, d_in), dtype=jnp.float32) * 0.05
    gamma = jnp.ones((1, d_in), dtype=jnp.float32)   # nn.LayerNorm default weight
    beta = jnp.zeros((1, d_in), dtype=jnp.float32)   # nn.LayerNorm default bias

    # --- f32 path: exact match vs reference ---
    out = positionwise_feed_forward(x, w1, b1, w2, b2, gamma, beta)
    out = jax.block_until_ready(out)
    ref = _reference(x, w1, b1, w2, b2, gamma, beta)
    assert out.shape == (B, L, d_in)
    assert jnp.allclose(out, ref, atol=1e-5, rtol=1e-5), "f32 mismatch vs reference"

    # --- bf16 matmul path (MXU-native operands, f32 accumulation + f32 LayerNorm) ---
    xb = x.astype(jnp.bfloat16)
    w1b = w1.astype(jnp.bfloat16)
    w2b = w2.astype(jnp.bfloat16)
    out_bf = positionwise_feed_forward(xb, w1b, b1, w2b, b2, gamma, beta)
    out_bf = jax.block_until_ready(out_bf)
    ref_bf = _reference(xb.astype(jnp.float32), w1b.astype(jnp.float32), b1,
                        w2b.astype(jnp.float32), b2, gamma, beta)
    assert out_bf.shape == (B, L, d_in)
    assert jnp.allclose(out_bf.astype(jnp.float32), ref_bf, atol=3e-2, rtol=3e-2), \
        "bf16 mismatch vs reference"

    print("KERNEL_OK")
</pallas_src>

<mosaic_0001>
module attributes {stable_mosaic.version = 11 : i64} {
  func.func @_ffn_kernel(%arg0: i32, %arg1: memref<16x128xf32, #tpu.memory_space<vmem>>, %arg2: memref<128x128xf32, #tpu.memory_space<vmem>>, %arg3: memref<1x128xf32, #tpu.memory_space<vmem>>, %arg4: memref<128x128xf32, #tpu.memory_space<vmem>>, %arg5: memref<1x128xf32, #tpu.memory_space<vmem>>, %arg6: memref<1x128xf32, #tpu.memory_space<vmem>>, %arg7: memref<1x128xf32, #tpu.memory_space<vmem>>, %arg8: memref<16x128xf32, #tpu.memory_space<vmem>>) attributes {dimension_semantics = [#tpu.dimension_semantics<parallel>], iteration_bounds = array<i64: 1>, scalar_prefetch = 0 : i64, scratch_operands = 0 : i64, tpu.core_type = #tpu.core_type<tc>, window_params = [{transform_indices = @transform_0, window_bounds = array<i64: 16, 128>}, {pipeline_mode = #tpu.pipeline_mode<synchronous>, transform_indices = @transform_1, window_bounds = array<i64: 128, 128>}, {pipeline_mode = #tpu.pipeline_mode<synchronous>, transform_indices = @transform_2, window_bounds = array<i64: 1, 128>}, {pipeline_mode = #tpu.pipeline_mode<synchronous>, transform_indices = @transform_3, window_bounds = array<i64: 128, 128>}, {pipeline_mode = #tpu.pipeline_mode<synchronous>, transform_indices = @transform_4, window_bounds = array<i64: 1, 128>}, {pipeline_mode = #tpu.pipeline_mode<synchronous>, transform_indices = @transform_5, window_bounds = array<i64: 1, 128>}, {pipeline_mode = #tpu.pipeline_mode<synchronous>, transform_indices = @transform_6, window_bounds = array<i64: 1, 128>}, {transform_indices = @transform_7, window_bounds = array<i64: 16, 128>}]} {
    %c0 = arith.constant 0 : index
    %c0_0 = arith.constant 0 : index
    %0 = vector.load %arg1[%c0, %c0_0] : memref<16x128xf32, #tpu.memory_space<vmem>>, vector<16x128xf32>
    %c0_1 = arith.constant 0 : index
    %c0_2 = arith.constant 0 : index
    %1 = vector.load %arg2[%c0_1, %c0_2] : memref<128x128xf32, #tpu.memory_space<vmem>>, vector<128x128xf32>
    %cst = arith.constant dense<0.000000e+00> : vector<16x128xf32>
    %2 = tpu.matmul %0, %1, %cst {dimension_numbers = #tpu.dot_dimension_numbers<[1], [0], [0], [1], [0, 0, 1, 1], [], []>} : vector<16x128xf32>, vector<128x128xf32>, vector<16x128xf32> -> vector<16x128xf32>
    %c0_3 = arith.constant 0 : index
    %c0_4 = arith.constant 0 : index
    %3 = vector.load %arg3[%c0_3, %c0_4] : memref<1x128xf32, #tpu.memory_space<vmem>>, vector<1x128xf32>
    %4 = vector.broadcast %3 : vector<1x128xf32> to vector<16x128xf32>
    %5 = arith.addf %2, %4 : vector<16x128xf32>
    %cst_5 = arith.constant 0.000000e+00 : f32
    %6 = vector.broadcast %cst_5 : f32 to vector<16x128xf32>
    %7 = arith.maximumf %5, %6 : vector<16x128xf32>
    %c0_6 = arith.constant 0 : index
    %c0_7 = arith.constant 0 : index
    %8 = vector.load %arg4[%c0_6, %c0_7] : memref<128x128xf32, #tpu.memory_space<vmem>>, vector<128x128xf32>
    %cst_8 = arith.constant dense<0.000000e+00> : vector<16x128xf32>
    %9 = tpu.matmul %7, %8, %cst_8 {dimension_numbers = #tpu.dot_dimension_numbers<[1], [0], [0], [1], [0, 0, 1, 1], [], []>} : vector<16x128xf32>, vector<128x128xf32>, vector<16x128xf32> -> vector<16x128xf32>
    %c0_9 = arith.constant 0 : index
    %c0_10 = arith.constant 0 : index
    %10 = vector.load %arg5[%c0_9, %c0_10] : memref<1x128xf32, #tpu.memory_space<vmem>>, vector<1x128xf32>
    %11 = vector.broadcast %10 : vector<1x128xf32> to vector<16x128xf32>
    %12 = arith.addf %9, %11 : vector<16x128xf32>
    %13 = arith.addf %12, %0 : vector<16x128xf32>
    %14 = tpu.iota {dimensions = array<i32: 1>} : vector<16x128xi32>
    %c32_i32 = arith.constant 32 : i32
    %15 = vector.broadcast %c32_i32 : i32 to vector<16x128xi32>
    %16 = arith.cmpi slt, %14, %15 : vector<16x128xi32>
    %cst_11 = arith.constant dense<0.000000e+00> : vector<16xf32>
    %17 = vector.multi_reduction <add>, %13, %cst_11 [1] : vector<16x128xf32> to vector<16xf32>
    %18 = vector.shape_cast %17 : vector<16xf32> to vector<16x1xf32>
    %cst_12 = arith.constant 3.125000e-02 : f32
    %19 = vector.broadcast %cst_12 : f32 to vector<16x1xf32>
    %20 = arith.mulf %18, %19 : vector<16x1xf32>
    %21 = vector.broadcast %20 : vector<16x1xf32> to vector<16x128xf32>
    %22 = arith.subf %13, %21 : vector<16x128xf32>
    %cst_13 = arith.constant 0.000000e+00 : f32
    %23 = vector.broadcast %cst_13 : f32 to vector<16x128xf32>
    %24 = arith.select %16, %22, %23 : vector<16x128xi1>, vector<16x128xf32>
    %25 = arith.mulf %24, %24 : vector<16x128xf32>
    %cst_14 = arith.constant dense<0.000000e+00> : vector<16xf32>
    %26 = vector.multi_reduction <add>, %25, %cst_14 [1] : vector<16x128xf32> to vector<16xf32>
    %27 = vector.shape_cast %26 : vector<16xf32> to vector<16x1xf32>
    %cst_15 = arith.constant 3.125000e-02 : f32
    %28 = vector.broadcast %cst_15 : f32 to vector<16x1xf32>
    %29 = arith.mulf %27, %28 : vector<16x1xf32>
    %cst_16 = arith.constant 9.99999974E-6 : f32
    %30 = vector.broadcast %cst_16 : f32 to vector<16x1xf32>
    %31 = arith.addf %29, %30 : vector<16x1xf32>
    %32 = math.rsqrt %31 : vector<16x1xf32>
    %33 = vector.broadcast %32 : vector<16x1xf32> to vector<16x128xf32>
    %34 = arith.mulf %24, %33 : vector<16x128xf32>
    %c0_17 = arith.constant 0 : index
    %c0_18 = arith.constant 0 : index
    %35 = vector.load %arg6[%c0_17, %c0_18] : memref<1x128xf32, #tpu.memory_space<vmem>>, vector<1x128xf32>
    %36 = vector.broadcast %35 : vector<1x128xf32> to vector<16x128xf32>
    %37 = arith.mulf %34, %36 : vector<16x128xf32>
    %c0_19 = arith.constant 0 : index
    %c0_20 = arith.constant 0 : index
    %38 = vector.load %arg7[%c0_19, %c0_20] : memref<1x128xf32, #tpu.memory_space<vmem>>, vector<1x128xf32>
    %39 = vector.broadcast %38 : vector<1x128xf32> to vector<16x128xf32>
    %40 = arith.addf %37, %39 : vector<16x128xf32>
    %c0_21 = arith.constant 0 : index
    %c0_22 = arith.constant 0 : index
    %41 = vector.load %arg8[%c0_21, %c0_22] : memref<16x128xf32, #tpu.memory_space<vmem>>, vector<16x128xf32>
    tpu.vector_store %arg8[%c0_21, %c0_22], %40 {strides = array<i32>} : memref<16x128xf32, #tpu.memory_space<vmem>>, vector<16x128xf32>,
    return
  }
  func.func @transform_0(%arg0: i32) -> (i32, i32) {
    %c0_i32 = arith.constant 0 : i32
    %c0_i32_0 = arith.constant 0 : i32
    return %arg0, %c0_i32 : i32, i32
  }
  func.func @transform_1(%arg0: i32) -> (i32, i32) {
    %c0_i32 = arith.constant 0 : i32
    %c0_i32_0 = arith.constant 0 : i32
    %c0_i32_1 = arith.constant 0 : i32
    return %c0_i32, %c0_i32_0 : i32, i32
  }
  func.func @transform_2(%arg0: i32) -> (i32, i32) {
    %c0_i32 = arith.constant 0 : i32
    %c0_i32_0 = arith.constant 0 : i32
    %c0_i32_1 = arith.constant 0 : i32
    return %c0_i32, %c0_i32_0 : i32, i32
  }
  func.func @transform_3(%arg0: i32) -> (i32, i32) {
    %c0_i32 = arith.constant 0 : i32
    %c0_i32_0 = arith.constant 0 : i32
    %c0_i32_1 = arith.constant 0 : i32
    return %c0_i32, %c0_i32_0 : i32, i32
  }
  func.func @transform_4(%arg0: i32) -> (i32, i32) {
    %c0_i32 = arith.constant 0 : i32
    %c0_i32_0 = arith.constant 0 : i32
    %c0_i32_1 = arith.constant 0 : i32
    return %c0_i32, %c0_i32_0 : i32, i32
  }
  func.func @transform_5(%arg0: i32) -> (i32, i32) {
    %c0_i32 = arith.constant 0 : i32
    %c0_i32_0 = arith.constant 0 : i32
    %c0_i32_1 = arith.constant 0 : i32
    return %c0_i32, %c0_i32_0 : i32, i32
  }
  func.func @transform_6(%arg0: i32) -> (i32, i32) {
    %c0_i32 = arith.constant 0 : i32
    %c0_i32_0 = arith.constant 0 : i32
    %c0_i32_1 = arith.constant 0 : i32
    return %c0_i32, %c0_i32_0 : i32, i32
  }
  func.func @transform_7(%arg0: i32) -> (i32, i32) {
    %c0_i32 = arith.constant 0 : i32
    %c0_i32_0 = arith.constant 0 : i32
    return %arg0, %c0_i32 : i32, i32
  }
}

</mosaic_0001>

<bundles_post_ra>
// kernel: positionwise_feed_forward.1
= control target key start
LH: loop header
LB: loop body
LE: loop exit
PB: predicated region body
PF: predicated region fallthrough
CT: control target
= control target key end

     0   :  { %s621_s1 = inlined_call_operand.vmem [shape: f32[128,128], index: 1, kind: input, shape index: {}]   ;;  %s622_s0 = inlined_call_operand.vmem [shape: f32[16,128], index: 0, kind: input, shape index: {}]   ;;  %s623_s3 = inlined_call_operand.vmem [shape: f32[128,128], index: 3, kind: input, shape index: {}]   ;;  %s624_s2 = inlined_call_operand.vmem [shape: f32[1,128], index: 2, kind: input, shape index: {}]   ;;  %s625_s4 = inlined_call_operand.vmem [shape: f32[1,128], index: 4, kind: input, shape index: {}]   ;;  %s626_s5 = inlined_call_operand.vmem [shape: f32[1,128], index: 5, kind: input, shape index: {}]   ;;  %s627_s6 = inlined_call_operand.vmem [shape: f32[1,128], index: 6, kind: input, shape index: {}]   ;;  %s628_s7 = inlined_call_operand.vmem [shape: f32[16,128], index: 7, kind: output, shape index: {}]  }
   0x1   :  { %v28_v0 = vld [vmem:[%s621_s1] sm:$0xff]  ;;  %v29_v1 = vld [vmem:[%s621_s1 + $0x8] sm:$0xff]  ;;  %v30_v2 = vld [vmem:[%s621_s1 + $0x10] sm:$0xff] }
   0x2   :  { %v389_v3 = vpack.c.bf16 %v29_v1, %v28_v0  ;;  %v31_v4 = vld [vmem:[%s621_s1 + $0x18] sm:$0xff]  ;;  %v32_v6 = vld [vmem:[%s621_s1 + $0x20] sm:$0xff]  ;;  %v33_v7 = vld [vmem:[%s621_s1 + $0x28] sm:$0xff]  ;;  %v228_v0 = vlaneseq }
   0x3   :  { %v393_v5 = vpack.c.bf16 %v31_v4, %v30_v2  ;;  %v397_v8 = vpack.c.bf16 %v33_v7, %v32_v6  ;;  %v34_v9 = vld [vmem:[%s621_s1 + $0x30] sm:$0xff]  ;;  %v35_v10 = vld [vmem:[%s621_s1 + $0x38] sm:$0xff]  ;;  %v524_v11 = vld [vmem:[%s622_s0] sm:$0xff] }
   0x4   :  { %390 = vmatprep.subr.bf16.mxu0 %v389_v3  ;;  %351 = vmatprep.mubr.f32.mxu0 %v524_v11  ;;  %v128_v12 = vld [vmem:[%s623_s3] sm:$0xff]  ;;  %v129_v13 = vld [vmem:[%s623_s3 + $0x8] sm:$0xff]  ;;  %v130_v14 = vld [vmem:[%s623_s3 + $0x10] sm:$0xff]  ;;  %v401_v20 = vpack.c.bf16 %v35_v10, %v34_v9  ;;  %v229_v1 = vand.u32 127, %v228_v0 }
   0x5   :  { %392 = vmatpush3.bf16.msra.mxu0 %v389_v3  ;;  %v421_v15 = vpack.c.bf16 %v129_v13, %v128_v12  ;;  %v131_v16 = vld [vmem:[%s623_s3 + $0x18] sm:$0xff]  ;;  %v132_v18 = vld [vmem:[%s623_s3 + $0x20] sm:$0xff]  ;;  %v133_v19 = vld [vmem:[%s623_s3 + $0x28] sm:$0xff] }
   0x6   :  { %394 = vmatprep.subr.bf16.mxu0 %v393_v5  ;;  %v425_v17 = vpack.c.bf16 %v131_v16, %v130_v14  ;;  %v36_v21 = vld [vmem:[%s621_s1 + $0x40] sm:$0xff]  ;;  %v37_v22 = vld [vmem:[%s621_s1 + $0x48] sm:$0xff]  ;;  %v429_v23 = vpack.c.bf16 %v133_v19, %v132_v18  ;;  %v134_v24 = vld [vmem:[%s623_s3 + $0x30] sm:$0xff]  ;;  %vm230_vm0 = vcmp.lt.s32.totalorder %v229_v1, 32 }
   0x7   :  { %422 = vmatprep.subr.bf16.mxu1 %v421_v15  ;;  %v135_v25 = vld [vmem:[%s623_s3 + $0x38] sm:$0xff]  ;;  %v405_v26 = vpack.c.bf16 %v37_v22, %v36_v21  ;;  %v38_v27 = vld [vmem:[%s621_s1 + $0x50] sm:$0xff]  ;;  %v136_v30 = vld [vmem:[%s623_s3 + $0x40] sm:$0xff] }
   0x8   :  { %424 = vmatpush3.bf16.msra.mxu1 %v421_v15  ;;  %v39_v28 = vld [vmem:[%s621_s1 + $0x58] sm:$0xff]  ;;  %v433_v29 = vpack.c.bf16 %v135_v25, %v134_v24  ;;  %v137_v31 = vld [vmem:[%s623_s3 + $0x48] sm:$0xff]  ;;  %v40_v33 = vld [vmem:[%s621_s1 + $0x60] sm:$0xff] }
   0x9   :  { %396 = vmatpush3.bf16.msra.mxu0 %v393_v5  ;;  %426 = vmatprep.subr.bf16.mxu1 %v425_v17  ;;  %v409_v32 = vpack.c.bf16 %v39_v28, %v38_v27  ;;  %v41_v34 = vld [vmem:[%s621_s1 + $0x68] sm:$0xff]  ;;  %v437_v35 = vpack.c.bf16 %v137_v31, %v136_v30  ;;  %v138_v36 = vld [vmem:[%s623_s3 + $0x50] sm:$0xff]  ;;  %v139_v37 = vld [vmem:[%s623_s3 + $0x58] sm:$0xff] }
   0xa   :  { %398 = vmatprep.subr.bf16.mxu0 %v397_v8  ;;  %v413_v38 = vpack.c.bf16 %v41_v34, %v40_v33  ;;  %v42_v39 = vld [vmem:[%s621_s1 + $0x70] sm:$0xff]  ;;  %v43_v40 = vld [vmem:[%s621_s1 + $0x78] sm:$0xff]  ;;  %v441_v41 = vpack.c.bf16 %v139_v37, %v138_v36  ;;  %v140_v42 = vld [vmem:[%s623_s3 + $0x60] sm:$0xff] }
   0xb   :  { %v141_v43 = vld [vmem:[%s623_s3 + $0x68] sm:$0xff]  ;;  %v417_v44 = vpack.c.bf16 %v43_v40, %v42_v39  ;;  %v142_v47 = vld [vmem:[%s623_s3 + $0x70] sm:$0xff]  ;;  %v143_v48 = vld [vmem:[%s623_s3 + $0x78] sm:$0xff] }
   0xc   :  { %428 = vmatpush3.bf16.msra.mxu1 %v425_v17  ;;  %v445_v45 = vpack.c.bf16 %v141_v43, %v140_v42  ;;  %v27_v46 = vld [vmem:[%s622_s0 + $0x8] sm:$0xff]  ;;  %v449_v49 = vpack.c.bf16 %v143_v48, %v142_v47  ;;  %v279_v50 = vld [vmem:[%s624_s2] ss:$0 sm:$0xff] }
   0xd   :  { %400 = vmatpush3.bf16.msra.mxu0 %v397_v8  ;;  %430 = vmatprep.subr.bf16.mxu1 %v429_v23  ;;  %v280_v57 = vld [vmem:[%s625_s4] ss:$0 sm:$0xff] }
   0xe   :  { %402 = vmatprep.subr.bf16.mxu0 %v401_v20  ;;  %v281_v19 = vld [vmem:[%s626_s5] ss:$0 sm:$0xff] }
   0xf   :  { %v282_v21 = vld [vmem:[%s627_s6] ss:$0 sm:$0xff] }
  0x10   :  { %432 = vmatpush3.bf16.msra.mxu1 %v429_v23 }
  0x11   :  { %404 = vmatpush3.bf16.msra.mxu0 %v401_v20  ;;  %434 = vmatprep.subr.bf16.mxu1 %v433_v29 }
  0x12   :  { %406 = vmatprep.subr.bf16.mxu0 %v405_v26 }
  0x14   :  { %436 = vmatpush3.bf16.msra.mxu1 %v433_v29 }
  0x15   :  { %408 = vmatpush3.bf16.msra.mxu0 %v405_v26  ;;  %438 = vmatprep.subr.bf16.mxu1 %v437_v35 }
  0x16   :  { %410 = vmatprep.subr.bf16.mxu0 %v409_v32 }
  0x18   :  { %440 = vmatpush3.bf16.msra.mxu1 %v437_v35 }
  0x19   :  { %412 = vmatpush3.bf16.msra.mxu0 %v409_v32  ;;  %442 = vmatprep.subr.bf16.mxu1 %v441_v41 }
  0x1a   :  { %414 = vmatprep.subr.bf16.mxu0 %v413_v38 }
  0x1c   :  { %444 = vmatpush3.bf16.msra.mxu1 %v441_v41 }
  0x1d   :  { %416 = vmatpush3.bf16.msra.mxu0 %v413_v38  ;;  %446 = vmatprep.subr.bf16.mxu1 %v445_v45 }
  0x1e   :  { %418 = vmatprep.subr.bf16.mxu0 %v417_v44 }
  0x20   :  { %448 = vmatpush3.bf16.msra.mxu1 %v445_v45 }
  0x21   :  { %420 = vmatpush3.bf16.msra.mxu0 %v417_v44  ;;  %450 = vmatprep.subr.bf16.mxu1 %v449_v49 }
  0x24   :  { %352 = vmatmul.mubr.f32.vlgmr.msra.gmra.mrb[0].mxu0 %v27_v46  ;;  %452 = vmatpush3.bf16.msra.mxu1 %v449_v49 }
  0xf7   :  { %v353_v51 = vpop.f32.mrb[0].mxu0 }
  0xf8   :  { %v123_v52 = vadd.f32 %v353_v51, %v279_v50  ;;  %v117_v53 = vpop.f32.mrb[1].mxu0 }
  0xf9   :  { %v118_v54 = vadd.f32 %v279_v50, %v117_v53 }
  0xfa   :  { %v127_v56 = vmax.f32 %v123_v52, 0.0 }
  0xfb   :  { %v126_v55 = vmax.f32 %v118_v54, 0.0 }
  0xfd   :  { %386 = vmatprep.mubr.f32.mxu1 %v126_v55 }
  0xfe   :  { %387 = vmatmul.mubr.f32.vlgmr.msra.gmra.mrb[0].mxu1 %v127_v56 }
 0x1d1   :  { %v388_v58 = vpop.f32.mrb[0].mxu1 }
 0x1d2   :  { %v217_v59 = vpop.f32.mrb[1].mxu1  ;;  %v223_v61 = vadd.f32 %v388_v58, %v280_v57 }
 0x1d3   :  { %v218_v60 = vadd.f32 %v280_v57, %v217_v59 }
 0x1d4   :  { %v227_v63 = vadd.f32 %v223_v61, %v27_v46 }
 0x1d5   :  { %v226_v62 = vadd.f32 %v218_v60, %v524_v11 }
 0x1d7   :  { %231 = vadd.xlane.f32.xlu0 %v226_v62 }
 0x1db   :  { %233 = vadd.xlane.f32.xlu0 %v227_v63 }
 0x264   :  { %v232_v2 = vpop.xlane.xlu0 %231 }
 0x265   :  { %v235_v3 = vmul.f32 0.03125, %v232_v2 }
 0x267   :  { %v237_v4 = vsub.f32 %v226_v62, %v235_v3 }
 0x268   :  { %v234_v5 = vpop.xlane.xlu0 %233 }
 0x269   :  { %v236_v6 = vmul.f32 0.03125, %v234_v5  ;;  %v239_v7 = vsel %vm230_vm0, %v237_v4, 0.0 }
 0x26a   :  { %v241_v8 = vmul.f32 %v239_v7, %v239_v7 }
 0x26b   :  { %v238_v9 = vsub.f32 %v227_v63, %v236_v6 }
 0x26c   :  { %243 = vadd.xlane.f32.xlu1 %v241_v8 }
 0x26d   :  { %v240_v10 = vsel %vm230_vm0, %v238_v9, 0.0 }
 0x26e   :  { %v242_v12 = vmul.f32 %v240_v10, %v240_v10 }
 0x270   :  { %245 = vadd.xlane.f32.xlu1 %v242_v12 }
 0x2f9   :  { %v244_v13 = vpop.xlane.xlu1 %243 }
 0x2fa   :  { %v247_v11 = vmul.f32 0.03125, %v244_v13 }
 0x2fc   :  { %v249_v14 = vadd.f32 1e-05, %v247_v11 }
 0x2fd   :  { %v246_v15 = vpop.xlane.xlu1 %245 }
 0x2fe   :  { %453 = vrsqrt.f32 %v249_v14  ;;  %v248_v16 = vmul.f32 0.03125, %v246_v15 }
 0x300   :  { %v250_v17 = vadd.f32 1e-05, %v248_v16 }
 0x302   :  { %455 = vrsqrt.f32 %v250_v17 }
 0x308   :  { %v454_v18 = vpop.eup %453 }
 0x309   :  { %v253_v20 = vmul.f32 %v454_v18, %v239_v7 }
 0x30b   :  { %v262_v22 = vmul.f32 %v281_v19, %v253_v20 }
 0x30c   :  { %v456_v23 = vpop.eup %455 }
 0x30d   :  { %v271_v24 = vadd.f32 %v282_v21, %v262_v22  ;;  %v254_v25 = vmul.f32 %v456_v23, %v240_v10 }
 0x30f   :  { %273 = vst [vmem:[%s628_s7] sm:$0xff] %v271_v24  ;;  %v263_v26 = vmul.f32 %v281_v19, %v254_v25 }
 0x311   :  { %v272_v27 = vadd.f32 %v282_v21, %v263_v26 }
 0x313   :  { %274 = vst [vmem:[%s628_s7 + $0x8] sm:$0xff] %v272_v27 }

</bundles_post_ra>
